<compile_context>
chip_gen: v7x
topology: tpu7x:2x2x1
jax: 0.10.0
libtpu: 0.0.40
codegen_flags: <defaults>
</compile_context>

<pallas_src>
import functools

import jax
import jax.numpy as jnp
from jax.experimental import pallas as pl
from jax.experimental.pallas import tpu as pltpu

hidden_size = 32
num_layers = 3
input_size = 8     # stands in for X_train.shape[1] (excel file not available)
batch = 2
seq_len = 8

_PAD = 128         # lane-padded fused hidden width (num_layers*hidden = 96 -> 128)
assert num_layers * hidden_size <= _PAD


def _rnn_wavefront_kernel(x_ref, slab_ref, out_ref, *, T, H):
    """3-layer tanh RNN stack + Linear(H,1), fused layer-skewed wavefront.

    x_ref:    (T*B, D) f32   time-major input, row t*B+b = x[b, t]
    slab_ref: (P+D+3, P) f32 packed constants (P = 128):
                rows [0, P)    : W_fused (block-structured, see pack_params)
                rows [P, P+D)  : W_ih0^T padded to P lanes
                row  P+D       : summed biases  [b0 | b1 | b2 | 0]
                row  P+D+1     : fc weights     [ 0 |  0 | Wfc| 0]
                row  P+D+2     : fc bias broadcast across lanes
    out_ref:  (B, 1) f32
    """
    TB, D = x_ref.shape
    B = TB // T
    P = slab_ref.shape[1]

    # ---- unpack the single packed constant slab ----
    w_fused = slab_ref[0:P, :]                    # (P, P)
    w_in0   = slab_ref[P:P + D, :]                # (D, P)
    bias    = slab_ref[P + D:P + D + 1, :]        # (1, P)
    w_fc    = slab_ref[P + D + 1:P + D + 2, :]    # (1, P)
    b_fc    = slab_ref[P + D + 2:P + D + 3, :]    # (1, P) (all lanes identical)

    # ---- layer-0 input projection for ALL timesteps (no recurrent dependency):
    # one batched MXU dot instead of T serialized ones; biases folded in once. ----
    xproj = jnp.dot(x_ref[...], w_in0, preferred_element_type=jnp.float32)
    xproj = xproj + jnp.broadcast_to(bias, (TB, P))        # (T*B, P)
    bias_b = jnp.broadcast_to(bias, (B, P))                # additive slab for epilogue waves

    lane = jax.lax.broadcasted_iota(jnp.int32, (B, P), 1)

    # Wavefront state, lane-packed: lanes [0,H)=h0, [H,2H)=h1, [2H,3H)=h2, rest 0.
    h = jnp.zeros((B, P), jnp.float32)

    # Layer-skewed wavefront: the three layer updates of each wave are independent and
    # fused into ONE (B,P)@(P,P) dot via the block-structured w_fused.  Statically
    # unrolled (T is tiny) so the LLO scheduler sees the whole chain.
    for w in range(T + num_layers - 1):
        add = xproj[w * B:(w + 1) * B, :] if w < T else bias_b   # static slice
        h = jnp.tanh(jnp.dot(h, w_fused, preferred_element_type=jnp.float32) + add)
        # Prologue: deeper layers must stay zero until their first valid wave.
        if w < num_layers - 1:
            h = jnp.where(lane < (w + 1) * H, h, 0.0)

    # Final Linear(H, 1) on h2[T-1] (lanes [2H,3H)): VPU multiply + lane reduction.
    # w_fc is zero outside [2H,3H), so stale h0/h1 lanes contribute nothing.
    out_ref[...] = jnp.sum(h * w_fc, axis=-1, keepdims=True) + b_fc[:, 0:1]


def init_params(key):
    """Deterministic init mirroring PyTorch's uniform(-1/sqrt(H), 1/sqrt(H))."""
    k = 1.0 / jnp.sqrt(jnp.float32(hidden_size))
    params = {}
    keys = jax.random.split(key, num_layers * 4 + 2)
    ki = 0
    for l in range(num_layers):
        d_in = input_size if l == 0 else hidden_size
        w_ih = jax.random.uniform(keys[ki], (hidden_size, d_in), jnp.float32, -k, k); ki += 1
        w_hh = jax.random.uniform(keys[ki], (hidden_size, hidden_size), jnp.float32, -k, k); ki += 1
        b_ih = jax.random.uniform(keys[ki], (hidden_size,), jnp.float32, -k, k); ki += 1
        b_hh = jax.random.uniform(keys[ki], (hidden_size,), jnp.float32, -k, k); ki += 1
        params[f'l{l}'] = (w_ih, w_hh, b_ih, b_hh)
    params['fc_w'] = jax.random.uniform(keys[ki], (1, hidden_size), jnp.float32, -k, k); ki += 1
    params['fc_b'] = jax.random.uniform(keys[ki], (1,), jnp.float32, -k, k)
    return params


def pack_params(params):
    """Pack every weight/bias into one lane-padded f32 slab (done once, reused per call)."""
    H, D, P = hidden_size, input_size, _PAD
    w_fused = jnp.zeros((P, P), jnp.float32)
    bias = jnp.zeros((1, P), jnp.float32)
    for l in range(num_layers):
        w_ih, w_hh, b_ih, b_hh = params[f'l{l}']
        lo, hi = l * H, (l + 1) * H
        w_fused = w_fused.at[lo:hi, lo:hi].set(w_hh.T)                 # recurrent block
        if l + 1 < num_layers:
            w_ih_next = params[f'l{l + 1}'][0]
            w_fused = w_fused.at[lo:hi, hi:hi + H].set(w_ih_next.T)    # feeds next layer
        bias = bias.at[0, lo:hi].set(b_ih + b_hh)                      # pre-summed biases
    w_in0 = jnp.zeros((D, P), jnp.float32).at[:, 0:H].set(params['l0'][0].T)
    w_fc = jnp.zeros((1, P), jnp.float32).at[0, (num_layers - 1) * H:num_layers * H].set(
        params['fc_w'][0])
    b_fc = jnp.full((1, P), params['fc_b'][0], jnp.float32)
    return jnp.concatenate([w_fused, w_in0, bias, w_fc, b_fc], axis=0)  # (P+D+3, P)


@jax.jit
def rnn_regressor_forward(x_btd, slab):
    """x_btd: (B, T, D) batch-first input; slab: packed constants from pack_params."""
    B, T, D = x_btd.shape
    x_tbd = jnp.transpose(x_btd, (1, 0, 2)).astype(jnp.float32)   # time-major
    x2d = x_tbd.reshape(T * B, D)

    vmem = pl.BlockSpec(memory_space=pltpu.MemorySpace.VMEM)
    kernel = functools.partial(_rnn_wavefront_kernel, T=T, H=hidden_size)
    return pl.pallas_call(
        kernel,
        out_shape=jax.ShapeDtypeStruct((B, 1), jnp.float32),
        in_specs=[vmem, vmem],
        out_specs=vmem,
    )(x2d, slab.astype(jnp.float32))
    # TODO(synk): if batch ever grows large, add a batch grid axis with
    # dimension_semantics=("parallel",) so v7x's second TensorCore is used.


def rnn_regressor_reference(x_btd, params):
    """Plain-JAX reference matching torch.nn.RNN(tanh, batch_first) + Linear."""
    B, T, _ = x_btd.shape
    outs = x_btd.astype(jnp.float32)
    for l in range(num_layers):
        w_ih, w_hh, b_ih, b_hh = params[f'l{l}']
        h = jnp.zeros((B, hidden_size), jnp.float32)
        seq = []
        for t in range(T):
            h = jnp.tanh(outs[:, t, :] @ w_ih.T + b_ih + h @ w_hh.T + b_hh)
            seq.append(h)
        outs = jnp.stack(seq, axis=1)
    return outs[:, -1, :] @ params['fc_w'].T + params['fc_b']


if __name__ == "__main__":
    key = jax.random.PRNGKey(0)
    k_x, k_p = jax.random.split(key)
    x = jax.random.normal(k_x, (batch, seq_len, input_size), jnp.float32)
    params = init_params(k_p)
    slab = pack_params(params)

    out = rnn_regressor_forward(x, slab)
    out = jax.block_until_ready(out)

    ref = rnn_regressor_reference(x, params)
    assert out.shape == (batch, 1), out.shape
    assert jnp.allclose(out, ref, atol=2e-5, rtol=2e-5), (out, ref)

    print("KERNEL_OK")
</pallas_src>

<mosaic_0001>
module attributes {stable_mosaic.version = 11 : i64} {
  func.func @_rnn_wavefront_kernel(%arg0: memref<16x8xf32, #tpu.memory_space<vmem>>, %arg1: memref<139x128xf32, #tpu.memory_space<vmem>>, %arg2: memref<2x1xf32, #tpu.memory_space<vmem>>) attributes {dimension_semantics = [], scalar_prefetch = 0 : i64, scratch_operands = 0 : i64, tpu.core_type = #tpu.core_type<tc>} {
    %c0 = arith.constant 0 : index
    %c0_0 = arith.constant 0 : index
    %0 = vector.load %arg1[%c0, %c0_0] : memref<139x128xf32, #tpu.memory_space<vmem>>, vector<128x128xf32>
    %c128 = arith.constant 128 : index
    %c0_1 = arith.constant 0 : index
    %1 = vector.load %arg1[%c128, %c0_1] : memref<139x128xf32, #tpu.memory_space<vmem>>, vector<8x128xf32>
    %c136 = arith.constant 136 : index
    %c0_2 = arith.constant 0 : index
    %2 = vector.load %arg1[%c136, %c0_2] : memref<139x128xf32, #tpu.memory_space<vmem>>, vector<1x128xf32>
    %c137 = arith.constant 137 : index
    %c0_3 = arith.constant 0 : index
    %3 = vector.load %arg1[%c137, %c0_3] : memref<139x128xf32, #tpu.memory_space<vmem>>, vector<1x128xf32>
    %c138 = arith.constant 138 : index
    %c0_4 = arith.constant 0 : index
    %4 = vector.load %arg1[%c138, %c0_4] : memref<139x128xf32, #tpu.memory_space<vmem>>, vector<1x128xf32>
    %c0_5 = arith.constant 0 : index
    %c0_6 = arith.constant 0 : index
    %5 = vector.load %arg0[%c0_5, %c0_6] : memref<16x8xf32, #tpu.memory_space<vmem>>, vector<16x8xf32>
    %cst = arith.constant dense<0.000000e+00> : vector<16x128xf32>
    %6 = tpu.matmul %5, %1, %cst {dimension_numbers = #tpu.dot_dimension_numbers<[1], [0], [0], [1], [0, 0, 1, 1], [], []>} : vector<16x8xf32>, vector<8x128xf32>, vector<16x128xf32> -> vector<16x128xf32>
    %7 = vector.shape_cast %2 : vector<1x128xf32> to vector<1x128xf32>
    %8 = vector.broadcast %7 : vector<1x128xf32> to vector<16x128xf32>
    %9 = arith.addf %6, %8 : vector<16x128xf32>
    %10 = vector.shape_cast %2 : vector<1x128xf32> to vector<1x128xf32>
    %11 = vector.broadcast %10 : vector<1x128xf32> to vector<2x128xf32>
    %12 = tpu.iota {dimensions = array<i32: 1>} : vector<2x128xi32>
    %cst_7 = arith.constant 0.000000e+00 : f32
    %13 = vector.broadcast %cst_7 : f32 to vector<2x128xf32>
    %14 = vector.extract_strided_slice %9 {offsets = [0, 0], sizes = [2, 128], strides = [1, 1]} : vector<16x128xf32> to vector<2x128xf32>
    %cst_8 = arith.constant dense<0.000000e+00> : vector<2x128xf32>
    %15 = tpu.matmul %13, %0, %cst_8 {dimension_numbers = #tpu.dot_dimension_numbers<[1], [0], [0], [1], [0, 0, 1, 1], [], []>} : vector<2x128xf32>, vector<128x128xf32>, vector<2x128xf32> -> vector<2x128xf32>
    %16 = arith.addf %15, %14 : vector<2x128xf32>
    %17 = math.tanh %16 : vector<2x128xf32>
    %c32_i32 = arith.constant 32 : i32
    %18 = vector.broadcast %c32_i32 : i32 to vector<2x128xi32>
    %19 = arith.cmpi slt, %12, %18 : vector<2x128xi32>
    %cst_9 = arith.constant 0.000000e+00 : f32
    %20 = vector.broadcast %cst_9 : f32 to vector<2x128xf32>
    %21 = arith.select %19, %17, %20 : vector<2x128xi1>, vector<2x128xf32>
    %22 = vector.extract_strided_slice %9 {offsets = [2, 0], sizes = [2, 128], strides = [1, 1]} : vector<16x128xf32> to vector<2x128xf32>
    %cst_10 = arith.constant dense<0.000000e+00> : vector<2x128xf32>
    %23 = tpu.matmul %21, %0, %cst_10 {dimension_numbers = #tpu.dot_dimension_numbers<[1], [0], [0], [1], [0, 0, 1, 1], [], []>} : vector<2x128xf32>, vector<128x128xf32>, vector<2x128xf32> -> vector<2x128xf32>
    %24 = arith.addf %23, %22 : vector<2x128xf32>
    %25 = math.tanh %24 : vector<2x128xf32>
    %c64_i32 = arith.constant 64 : i32
    %26 = vector.broadcast %c64_i32 : i32 to vector<2x128xi32>
    %27 = arith.cmpi slt, %12, %26 : vector<2x128xi32>
    %cst_11 = arith.constant 0.000000e+00 : f32
    %28 = vector.broadcast %cst_11 : f32 to vector<2x128xf32>
    %29 = arith.select %27, %25, %28 : vector<2x128xi1>, vector<2x128xf32>
    %30 = vector.extract_strided_slice %9 {offsets = [4, 0], sizes = [2, 128], strides = [1, 1]} : vector<16x128xf32> to vector<2x128xf32>
    %cst_12 = arith.constant dense<0.000000e+00> : vector<2x128xf32>
    %31 = tpu.matmul %29, %0, %cst_12 {dimension_numbers = #tpu.dot_dimension_numbers<[1], [0], [0], [1], [0, 0, 1, 1], [], []>} : vector<2x128xf32>, vector<128x128xf32>, vector<2x128xf32> -> vector<2x128xf32>
    %32 = arith.addf %31, %30 : vector<2x128xf32>
    %33 = math.tanh %32 : vector<2x128xf32>
    %34 = vector.extract_strided_slice %9 {offsets = [6, 0], sizes = [2, 128], strides = [1, 1]} : vector<16x128xf32> to vector<2x128xf32>
    %cst_13 = arith.constant dense<0.000000e+00> : vector<2x128xf32>
    %35 = tpu.matmul %33, %0, %cst_13 {dimension_numbers = #tpu.dot_dimension_numbers<[1], [0], [0], [1], [0, 0, 1, 1], [], []>} : vector<2x128xf32>, vector<128x128xf32>, vector<2x128xf32> -> vector<2x128xf32>
    %36 = arith.addf %35, %34 : vector<2x128xf32>
    %37 = math.tanh %36 : vector<2x128xf32>
    %38 = vector.extract_strided_slice %9 {offsets = [8, 0], sizes = [2, 128], strides = [1, 1]} : vector<16x128xf32> to vector<2x128xf32>
    %cst_14 = arith.constant dense<0.000000e+00> : vector<2x128xf32>
    %39 = tpu.matmul %37, %0, %cst_14 {dimension_numbers = #tpu.dot_dimension_numbers<[1], [0], [0], [1], [0, 0, 1, 1], [], []>} : vector<2x128xf32>, vector<128x128xf32>, vector<2x128xf32> -> vector<2x128xf32>
    %40 = arith.addf %39, %38 : vector<2x128xf32>
    %41 = math.tanh %40 : vector<2x128xf32>
    %42 = vector.extract_strided_slice %9 {offsets = [10, 0], sizes = [2, 128], strides = [1, 1]} : vector<16x128xf32> to vector<2x128xf32>
    %cst_15 = arith.constant dense<0.000000e+00> : vector<2x128xf32>
    %43 = tpu.matmul %41, %0, %cst_15 {dimension_numbers = #tpu.dot_dimension_numbers<[1], [0], [0], [1], [0, 0, 1, 1], [], []>} : vector<2x128xf32>, vector<128x128xf32>, vector<2x128xf32> -> vector<2x128xf32>
    %44 = arith.addf %43, %42 : vector<2x128xf32>
    %45 = math.tanh %44 : vector<2x128xf32>
    %46 = vector.extract_strided_slice %9 {offsets = [12, 0], sizes = [2, 128], strides = [1, 1]} : vector<16x128xf32> to vector<2x128xf32>
    %cst_16 = arith.constant dense<0.000000e+00> : vector<2x128xf32>
    %47 = tpu.matmul %45, %0, %cst_16 {dimension_numbers = #tpu.dot_dimension_numbers<[1], [0], [0], [1], [0, 0, 1, 1], [], []>} : vector<2x128xf32>, vector<128x128xf32>, vector<2x128xf32> -> vector<2x128xf32>
    %48 = arith.addf %47, %46 : vector<2x128xf32>
    %49 = math.tanh %48 : vector<2x128xf32>
    %50 = vector.extract_strided_slice %9 {offsets = [14, 0], sizes = [2, 128], strides = [1, 1]} : vector<16x128xf32> to vector<2x128xf32>
    %cst_17 = arith.constant dense<0.000000e+00> : vector<2x128xf32>
    %51 = tpu.matmul %49, %0, %cst_17 {dimension_numbers = #tpu.dot_dimension_numbers<[1], [0], [0], [1], [0, 0, 1, 1], [], []>} : vector<2x128xf32>, vector<128x128xf32>, vector<2x128xf32> -> vector<2x128xf32>
    %52 = arith.addf %51, %50 : vector<2x128xf32>
    %53 = math.tanh %52 : vector<2x128xf32>
    %cst_18 = arith.constant dense<0.000000e+00> : vector<2x128xf32>
    %54 = tpu.matmul %53, %0, %cst_18 {dimension_numbers = #tpu.dot_dimension_numbers<[1], [0], [0], [1], [0, 0, 1, 1], [], []>} : vector<2x128xf32>, vector<128x128xf32>, vector<2x128xf32> -> vector<2x128xf32>
    %55 = arith.addf %54, %11 : vector<2x128xf32>
    %56 = math.tanh %55 : vector<2x128xf32>
    %cst_19 = arith.constant dense<0.000000e+00> : vector<2x128xf32>
    %57 = tpu.matmul %56, %0, %cst_19 {dimension_numbers = #tpu.dot_dimension_numbers<[1], [0], [0], [1], [0, 0, 1, 1], [], []>} : vector<2x128xf32>, vector<128x128xf32>, vector<2x128xf32> -> vector<2x128xf32>
    %58 = arith.addf %57, %11 : vector<2x128xf32>
    %59 = math.tanh %58 : vector<2x128xf32>
    %60 = vector.broadcast %3 : vector<1x128xf32> to vector<2x128xf32>
    %61 = arith.mulf %59, %60 : vector<2x128xf32>
    %cst_20 = arith.constant dense<0.000000e+00> : vector<2xf32>
    %62 = vector.multi_reduction <add>, %61, %cst_20 [1] : vector<2x128xf32> to vector<2xf32>
    %63 = vector.shape_cast %62 : vector<2xf32> to vector<2x1xf32>
    %64 = vector.extract_strided_slice %4 {offsets = [0, 0], sizes = [1, 1], strides = [1, 1]} : vector<1x128xf32> to vector<1x1xf32>
    %65 = vector.broadcast %64 : vector<1x1xf32> to vector<2x1xf32>
    %66 = arith.addf %63, %65 : vector<2x1xf32>
    %c0_21 = arith.constant 0 : index
    %c0_22 = arith.constant 0 : index
    %67 = vector.load %arg2[%c0_21, %c0_22] : memref<2x1xf32, #tpu.memory_space<vmem>>, vector<2x1xf32>
    tpu.vector_store %arg2[%c0_21, %c0_22], %66 {strides = array<i32>} : memref<2x1xf32, #tpu.memory_space<vmem>>, vector<2x1xf32>,
    return
  }
}

</mosaic_0001>

<bundles_post_ra>
// kernel: rnn_regressor_forward.1
= control target key start
LH: loop header
LB: loop body
LE: loop exit
PB: predicated region body
PF: predicated region fallthrough
CT: control target
= control target key end

     0   :  { %7 = vsyncpa [#allocation3], 0  ;;  %s1709_s9 = smov [#allocation2]   ;;  %s1969_s0 = inlined_call_operand.vmem [shape: f32[16,8], index: 0, kind: input, shape index: {}]   ;;  %s1970_s1 = inlined_call_operand.hbm [shape: f32[139,128], index: 1, kind: input, shape index: {}]   ;;  %s1971_s2 = inlined_call_operand.vmem [shape: f32[2,1], index: 2, kind: output, shape index: {}]  }
   0x1   :  { %s15_s10 = sshll.u32 %s1709_s9, 4  ;;  %s1685_s13 = scalar_lea.hbm %s1970_s1, 2304  ;;  %s16_s10 = int_to_ptr.vmem [resolvable:$true] %s15_s10 }
   0x2   :  { %p1686_p0 = scmp.ne.s32.totalorder %s1970_s1, %s1685_s13  ;;  %p1689_p1 = scmp.lt.u32.totalorder %s1685_s13, %s1970_s1 }
   0x4   :  { %p1691_p2 = pnand %p1689_p1, %p1686_p0 }
   0x6   :  { %1694 = shalt.err (!%p1691_p2)
}
   0x7   :  { %s1695_s18 = scalar_lea.vmem %s16_s10, 2304  ;;  %p1700_p4 = scmp.lt.s32.totalorder %s16_s10, %s16_s10 }
   0x8   :  { %p1696_p3 = scmp.ne.s32.totalorder %s16_s10, %s1695_s18  ;;  %p1701_p5 = scmp.lt.s32.totalorder %s1695_s18, %s1695_s18 }
   0xa   :  { %p1702_p6 = por %p1701_p5, %p1700_p4 }
   0xc   :  { %p1703_p7 = pnand %p1702_p6, %p1696_p3 }
   0xe   :  { %1706 = shalt.err (!%p1703_p7)
}
   0xf   :  { %s1710_s19 = smov 128   ;;  %s1711_s20 = smov 8  }
  0x10   :  { %21 = dma.hbm_to_vmem [thread:$0]  %s1970_s1, 2304, %s16_s10, [#allocation3], %s1710_s19, %s1710_s19, %s1711_s20  }
  0x11   :  { %1707 = dma.done.wait [#allocation3], 2304  }
  0x12   :  { %1708 = vsyncadd [#allocation3], 4294964992  ;;  %v1712_v0 = vmov 0.0|0.0   ;;  %vm1713_vm0 = vmmov 0   ;;  %v1714_v1 = vmov 0.0   ;;  %v25_v2 = vld [vmem:[#allocation2] sm:$0xff]  ;;  %v133_v36 = vlaneseq }
  0x13   :  { %1419 = vmatprep.subr.bf16.mxu1 %v1712_v0  ;;  %1101 = vmatprep.mubr.msk.f32.mxu1 %vm1713_vm0, %v1714_v1  ;;  %v26_v3 = vld [vmem:[#allocation2 + $0x8] sm:$0xff]  ;;  %v27_v4 = vld [vmem:[#allocation2 + $0x10] sm:$0xff]  ;;  %v28_v6 = vld [vmem:[#allocation2 + $0x18] sm:$0xff]  ;;  %vm51_vm1 = vcmask 64512   ;;  %vm868_vm4 = vcmask 1041408   ;;  %vm877_vm5 = vcmask 1024  }
  0x14   :  { %v1745_v5 = vpack.c.bf16 %v26_v3, %v25_v2  ;;  %v1748_v7 = vpack.c.bf16 %v28_v6, %v27_v4  ;;  %v29_v8 = vld [vmem:[#allocation2 + $0x20] sm:$0xff]  ;;  %v30_v9 = vld [vmem:[#allocation2 + $0x28] sm:$0xff]  ;;  %v31_v14 = vld [vmem:[#allocation2 + $0x30] sm:$0xff]  ;;  %v134_v37 = vand.u32 127, %v133_v36 }
  0x15   :  { %v41_v10 = vld [vmem:[#allocation2 + $0x80] sm:$0xff]  ;;  %v46_v12 = vld [vmem:[%s1969_s0 + $0x8] sm:$0xff]  ;;  %v1758_v13 = vpack.c.bf16 %v30_v9, %v29_v8  ;;  %v32_v15 = vld [vmem:[#allocation2 + $0x38] sm:$0xff] }
  0x16   :  { %1421 = vmatpush3.bf16.msra.mxu1 %v1745_v5  ;;  %1064 = vmatprep.subr.mxu0 %v41_v10  ;;  %v45_v11 = vld [vmem:[%s1969_s0] sm:$0xff]  ;;  %v1767_v16 = vpack.c.bf16 %v32_v15, %v31_v14  ;;  %v34_v18 = vld [vmem:[#allocation2 + $0x48] sm:$0xff]  ;;  %v35_v20 = vld [vmem:[#allocation2 + $0x50] sm:$0xff]  ;;  %vm206_vm2 = vcmp.lt.s32.totalorder %v134_v37, 32  ;;  %vm282_vm3 = vcmp.lt.s32.totalorder %v134_v37, 64 }
  0x17   :  { %1422 = vmatprep.subr.bf16.mxu1 %v1712_v0  ;;  %1065 = vmatpush3.msra.mxu0 %v41_v10  ;;  %v33_v17 = vld [vmem:[#allocation2 + $0x40] sm:$0xff]  ;;  %v36_v21 = vld [vmem:[#allocation2 + $0x58] sm:$0xff]  ;;  %v38_v24 = vld [vmem:[#allocation2 + $0x68] sm:$0xff] }
  0x18   :  { %1066 = vmatprep.mubr.msk.f32.mxu0 %vm51_vm1, %v45_v11  ;;  %1443 = vmatprep.subr.bf16.mxu0 %v1712_v0  ;;  %v1773_v19 = vpack.c.bf16 %v34_v18, %v33_v17  ;;  %v1779_v22 = vpack.c.bf16 %v36_v21, %v35_v20  ;;  %v37_v23 = vld [vmem:[#allocation2 + $0x60] sm:$0xff]  ;;  %v39_v26 = vld [vmem:[#allocation2 + $0x70] sm:$0xff]  ;;  %v40_v27 = vld [vmem:[#allocation2 + $0x78] sm:$0xff] }
  0x19   :  { %1067 = vmatmul.mubr.msk.f32.vlgmr.msra.gmra.mrb[0].mxu0 %vm51_vm1, %v46_v12  ;;  %v1785_v25 = vpack.c.bf16 %v38_v24, %v37_v23  ;;  %v1791_v28 = vpack.c.bf16 %v40_v27, %v39_v26  ;;  %v1823_v31 = vld [vmem:[#allocation2 + $0x88] ss:$0 sm:$0xff]  ;;  %v889_v17 = vld [vmem:[#allocation2 + $0x89] ss:$0 sm:$0xff]  ;;  %v890_v21 = vld [vmem:[#allocation2 + $0x8a] ss:$0 sm:$0xff] }
  0x1a   :  { %1424 = vmatpush3.bf16.msra.mxu1 %v1748_v7  ;;  %1445 = vmatpush3.bf16.msra.mxu0 %v1745_v5 }
  0x1b   :  { %1425 = vmatprep.subr.bf16.mxu1 %v1712_v0  ;;  %1136 = vmatprep.mubr.msk.f32.mxu0 %vm1713_vm0, %v1714_v1 }
  0x1c   :  { %1446 = vmatprep.subr.bf16.mxu0 %v1712_v0 }
  0x1e   :  { %1427 = vmatpush3.bf16.msra.mxu1 %v1758_v13  ;;  %1448 = vmatpush3.bf16.msra.mxu0 %v1748_v7 }
  0x1f   :  { %1428 = vmatprep.subr.bf16.mxu1 %v1712_v0  ;;  %1449 = vmatprep.subr.bf16.mxu0 %v1712_v0 }
  0x22   :  { %1430 = vmatpush3.bf16.msra.mxu1 %v1767_v16  ;;  %1451 = vmatpush3.bf16.msra.mxu0 %v1758_v13 }
  0x23   :  { %1431 = vmatprep.subr.bf16.mxu1 %v1712_v0  ;;  %1452 = vmatprep.subr.bf16.mxu0 %v1712_v0 }
  0x26   :  { %1433 = vmatpush3.bf16.msra.mxu1 %v1773_v19  ;;  %1454 = vmatpush3.bf16.msra.mxu0 %v1767_v16 }
  0x27   :  { %1434 = vmatprep.subr.bf16.mxu1 %v1712_v0  ;;  %1455 = vmatprep.subr.bf16.mxu0 %v1712_v0 }
  0x2a   :  { %1436 = vmatpush3.bf16.msra.mxu1 %v1779_v22  ;;  %1457 = vmatpush3.bf16.msra.mxu0 %v1773_v19 }
  0x2b   :  { %1437 = vmatprep.subr.bf16.mxu1 %v1712_v0  ;;  %1458 = vmatprep.subr.bf16.mxu0 %v1712_v0 }
  0x2e   :  { %1439 = vmatpush3.bf16.msra.mxu1 %v1785_v25  ;;  %1460 = vmatpush3.bf16.msra.mxu0 %v1779_v22 }
  0x2f   :  { %1440 = vmatprep.subr.bf16.mxu1 %v1712_v0  ;;  %1461 = vmatprep.subr.bf16.mxu0 %v1712_v0 }
  0x32   :  { %1442 = vmatpush3.bf16.msra.mxu1 %v1791_v28  ;;  %1463 = vmatpush3.bf16.msra.mxu0 %v1785_v25 }
  0x33   :  { %1467 = vmatprep.subr.bf16.mxu1 %v1712_v0  ;;  %1464 = vmatprep.subr.bf16.mxu0 %v1712_v0 }
  0x35   :  { %1102 = vmatmul.mubr.f32.vlgmr.msra.gmra.mrb[0].mxu1 %v1714_v1 }
  0x36   :  { %1469 = vmatpush3.bf16.msra.mxu1 %v1745_v5  ;;  %1171 = vmatprep.mubr.msk.f32.mxu1 %vm1713_vm0, %v1714_v1 }
  0x37   :  { %1470 = vmatprep.subr.bf16.mxu1 %v1712_v0  ;;  %1466 = vmatpush3.bf16.msra.mxu0 %v1791_v28 }
  0x38   :  { %1491 = vmatprep.subr.bf16.mxu0 %v1712_v0 }
  0x3a   :  { %1472 = vmatpush3.bf16.msra.mxu1 %v1748_v7 }
  0x3b   :  { %1473 = vmatprep.subr.bf16.mxu1 %v1712_v0 }
  0x3e   :  { %1475 = vmatpush3.bf16.msra.mxu1 %v1758_v13 }
  0x3f   :  { %1476 = vmatprep.subr.bf16.mxu1 %v1712_v0 }
  0x42   :  { %1478 = vmatpush3.bf16.msra.mxu1 %v1767_v16 }
  0x43   :  { %1479 = vmatprep.subr.bf16.mxu1 %v1712_v0 }
  0x46   :  { %1481 = vmatpush3.bf16.msra.mxu1 %v1773_v19 }
  0x47   :  { %1482 = vmatprep.subr.bf16.mxu1 %v1712_v0 }
  0x4a   :  { %1484 = vmatpush3.bf16.msra.mxu1 %v1779_v22 }
  0x4b   :  { %1485 = vmatprep.subr.bf16.mxu1 %v1712_v0 }
  0x4e   :  { %1487 = vmatpush3.bf16.msra.mxu1 %v1785_v25 }
  0x4f   :  { %1488 = vmatprep.subr.bf16.mxu1 %v1712_v0 }
  0x52   :  { %1490 = vmatpush3.bf16.msra.mxu1 %v1791_v28 }
  0x53   :  { %1515 = vmatprep.subr.bf16.mxu1 %v1712_v0 }
  0xec   :  { %v1821_v29 = vpop.f32.mrb[0].mxu0 }
  0xed   :  { %v124_v30 = vpop.f32.mrb[1].mxu0  ;;  %v1906_v54 = vadd.f32 %v1821_v29, %v1823_v31 }
  0xee   :  { %v1826_v32 = vadd.f32 %v1823_v31, %v124_v30 }
  0xef   :  { %v502_v59 = vrot.slane %v1906_v54, 2  ;;  %v575_v2 = vrot.slane %v1906_v54, 4 }
  0xf0   :  { %v209_v39 = vrot.slane %v1826_v32, 2  ;;  %v284_v44 = vrot.slane %v1826_v32, 4  ;;  %v357_v49 = vrot.slane %v1826_v32, 6 }
 0x108   :  { %v201_v33 = vpop.f32.mrb[0].mxu1 }
 0x109   :  { %v202_v34 = vadd.f32 %v201_v33, %v1826_v32  ;;  %v1103_v35 = vpop.f32.mrb[1].mxu1 }
 0x10b   :  { %1665 = vtanh.f32 %v202_v34 }
 0x115   :  { %v1666_v38 = vpop.eup %1665 }
 0x116   :  { %1137 = vmatmul.mubr.msk.f32.vlgmr.msra.gmra.mrb[2].mxu0 %vm206_vm2, %v1666_v38 }
 0x117   :  { %1493 = vmatpush3.bf16.msra.mxu0 %v1745_v5  ;;  %1206 = vmatprep.mubr.msk.f32.mxu0 %vm1713_vm0, %v1714_v1 }
 0x118   :  { %1494 = vmatprep.subr.bf16.mxu0 %v1712_v0 }
 0x11b   :  { %1496 = vmatpush3.bf16.msra.mxu0 %v1748_v7 }
 0x11c   :  { %1497 = vmatprep.subr.bf16.mxu0 %v1712_v0 }
 0x11f   :  { %1499 = vmatpush3.bf16.msra.mxu0 %v1758_v13 }
 0x120   :  { %1500 = vmatprep.subr.bf16.mxu0 %v1712_v0 }
 0x123   :  { %1502 = vmatpush3.bf16.msra.mxu0 %v1767_v16 }
 0x124   :  { %1503 = vmatprep.subr.bf16.mxu0 %v1712_v0 }
 0x127   :  { %1505 = vmatpush3.bf16.msra.mxu0 %v1773_v19 }
 0x128   :  { %1506 = vmatprep.subr.bf16.mxu0 %v1712_v0 }
 0x12b   :  { %1508 = vmatpush3.bf16.msra.mxu0 %v1779_v22 }
 0x12c   :  { %1509 = vmatprep.subr.bf16.mxu0 %v1712_v0 }
 0x12f   :  { %1511 = vmatpush3.bf16.msra.mxu0 %v1785_v25 }
 0x130   :  { %1512 = vmatprep.subr.bf16.mxu0 %v1712_v0 }
 0x133   :  { %1514 = vmatpush3.bf16.msra.mxu0 %v1791_v28 }
 0x134   :  { %1539 = vmatprep.subr.bf16.mxu0 %v1712_v0 }
 0x1e9   :  { %v277_v40 = vpop.f32.mrb[2].mxu0 }
 0x1ea   :  { %v278_v41 = vadd.f32 %v277_v40, %v209_v39  ;;  %v1138_v42 = vpop.f32.mrb[3].mxu0 }
 0x1ec   :  { %1667 = vtanh.f32 %v278_v41 }
 0x1f6   :  { %v1668_v43 = vpop.eup %1667 }
 0x1f7   :  { %1172 = vmatmul.mubr.msk.f32.vlgmr.msra.gmra.mrb[2].mxu1 %vm282_vm3, %v1668_v43 }
 0x1f8   :  { %1517 = vmatpush3.bf16.msra.mxu1 %v1745_v5  ;;  %1241 = vmatprep.mubr.msk.f32.mxu1 %vm1713_vm0, %v1714_v1 }
 0x1f9   :  { %1518 = vmatprep.subr.bf16.mxu1 %v1712_v0 }
 0x1fc   :  { %1520 = vmatpush3.bf16.msra.mxu1 %v1748_v7 }
 0x1fd   :  { %1521 = vmatprep.subr.bf16.mxu1 %v1712_v0 }
 0x200   :  { %1523 = vmatpush3.bf16.msra.mxu1 %v1758_v13 }
 0x201   :  { %1524 = vmatprep.subr.bf16.mxu1 %v1712_v0 }
 0x204   :  { %1526 = vmatpush3.bf16.msra.mxu1 %v1767_v16 }
 0x205   :  { %1527 = vmatprep.subr.bf16.mxu1 %v1712_v0 }
 0x208   :  { %1529 = vmatpush3.bf16.msra.mxu1 %v1773_v19 }
 0x209   :  { %1530 = vmatprep.subr.bf16.mxu1 %v1712_v0 }
 0x20c   :  { %1532 = vmatpush3.bf16.msra.mxu1 %v1779_v22 }
 0x20d   :  { %1533 = vmatprep.subr.bf16.mxu1 %v1712_v0 }
 0x210   :  { %1535 = vmatpush3.bf16.msra.mxu1 %v1785_v25 }
 0x211   :  { %1536 = vmatprep.subr.bf16.mxu1 %v1712_v0 }
 0x214   :  { %1538 = vmatpush3.bf16.msra.mxu1 %v1791_v28 }
 0x215   :  { %1563 = vmatprep.subr.bf16.mxu1 %v1712_v0 }
 0x2ca   :  { %v352_v45 = vpop.f32.mrb[2].mxu1 }
 0x2cb   :  { %v353_v46 = vadd.f32 %v352_v45, %v284_v44  ;;  %v1173_v47 = vpop.f32.mrb[3].mxu1 }
 0x2cd   :  { %1669 = vtanh.f32 %v353_v46 }
 0x2d7   :  { %v1670_v48 = vpop.eup %1669 }
 0x2d8   :  { %1207 = vmatmul.mubr.f32.vlgmr.msra.gmra.mrb[4].mxu0 %v1670_v48 }
 0x2d9   :  { %1541 = vmatpush3.bf16.msra.mxu0 %v1745_v5  ;;  %1276 = vmatprep.mubr.msk.f32.mxu0 %vm1713_vm0, %v1714_v1 }
 0x2da   :  { %1542 = vmatprep.subr.bf16.mxu0 %v1712_v0 }
 0x2dd   :  { %1544 = vmatpush3.bf16.msra.mxu0 %v1748_v7 }
 0x2de   :  { %1545 = vmatprep.subr.bf16.mxu0 %v1712_v0 }
 0x2e1   :  { %1547 = vmatpush3.bf16.msra.mxu0 %v1758_v13 }
 0x2e2   :  { %1548 = vmatprep.subr.bf16.mxu0 %v1712_v0 }
 0x2e5   :  { %1550 = vmatpush3.bf16.msra.mxu0 %v1767_v16 }
 0x2e6   :  { %1551 = vmatprep.subr.bf16.mxu0 %v1712_v0 }
 0x2e9   :  { %1553 = vmatpush3.bf16.msra.mxu0 %v1773_v19 }
 0x2ea   :  { %1554 = vmatprep.subr.bf16.mxu0 %v1712_v0 }
 0x2ed   :  { %1556 = vmatpush3.bf16.msra.mxu0 %v1779_v22 }
 0x2ee   :  { %1557 = vmatprep.subr.bf16.mxu0 %v1712_v0 }
 0x2f1   :  { %1559 = vmatpush3.bf16.msra.mxu0 %v1785_v25 }
 0x2f2   :  { %1560 = vmatprep.subr.bf16.mxu0 %v1712_v0 }
 0x2f5   :  { %1562 = vmatpush3.bf16.msra.mxu0 %v1791_v28 }
 0x2f6   :  { %1587 = vmatprep.subr.bf16.mxu0 %v1712_v0 }
 0x3ab   :  { %v425_v50 = vpop.f32.mrb[4].mxu0 }
 0x3ac   :  { %v426_v51 = vadd.f32 %v425_v50, %v357_v49  ;;  %v1208_v52 = vpop.f32.mrb[5].mxu0 }
 0x3ae   :  { %1671 = vtanh.f32 %v426_v51 }
 0x3b8   :  { %v1672_v53 = vpop.eup %1671 }
 0x3b9   :  { %1242 = vmatmul.mubr.f32.vlgmr.msra.gmra.mrb[4].mxu1 %v1672_v53 }
 0x3ba   :  { %1565 = vmatpush3.bf16.msra.mxu1 %v1745_v5  ;;  %1311 = vmatprep.mubr.msk.f32.mxu1 %vm1713_vm0, %v1714_v1 }
 0x3bb   :  { %1566 = vmatprep.subr.bf16.mxu1 %v1712_v0 }
 0x3be   :  { %1568 = vmatpush3.bf16.msra.mxu1 %v1748_v7 }
 0x3bf   :  { %1569 = vmatprep.subr.bf16.mxu1 %v1712_v0 }
 0x3c2   :  { %1571 = vmatpush3.bf16.msra.mxu1 %v1758_v13 }
 0x3c3   :  { %1572 = vmatprep.subr.bf16.mxu1 %v1712_v0 }
 0x3c6   :  { %1574 = vmatpush3.bf16.msra.mxu1 %v1767_v16 }
 0x3c7   :  { %1575 = vmatprep.subr.bf16.mxu1 %v1712_v0 }
 0x3ca   :  { %1577 = vmatpush3.bf16.msra.mxu1 %v1773_v19 }
 0x3cb   :  { %1578 = vmatprep.subr.bf16.mxu1 %v1712_v0 }
 0x3ce   :  { %1580 = vmatpush3.bf16.msra.mxu1 %v1779_v22 }
 0x3cf   :  { %1581 = vmatprep.subr.bf16.mxu1 %v1712_v0 }
 0x3d2   :  { %1583 = vmatpush3.bf16.msra.mxu1 %v1785_v25 }
 0x3d3   :  { %1584 = vmatprep.subr.bf16.mxu1 %v1712_v0 }
 0x3d6   :  { %1586 = vmatpush3.bf16.msra.mxu1 %v1791_v28 }
 0x3d7   :  { %1611 = vmatprep.subr.bf16.mxu1 %v1712_v0 }
 0x48c   :  { %v496_v55 = vpop.f32.mrb[4].mxu1 }
 0x48d   :  { %v497_v56 = vadd.f32 %v496_v55, %v1906_v54  ;;  %v1243_v57 = vpop.f32.mrb[5].mxu1 }
 0x48f   :  { %1673 = vtanh.f32 %v497_v56 }
 0x499   :  { %v1674_v58 = vpop.eup %1673 }
 0x49a   :  { %1277 = vmatmul.mubr.f32.vlgmr.msra.gmra.mrb[6].mxu0 %v1674_v58 }
 0x49b   :  { %1589 = vmatpush3.bf16.msra.mxu0 %v1745_v5  ;;  %1346 = vmatprep.mubr.msk.f32.mxu0 %vm1713_vm0, %v1714_v1 }
 0x49c   :  { %1590 = vmatprep.subr.bf16.mxu0 %v1712_v0 }
 0x49f   :  { %1592 = vmatpush3.bf16.msra.mxu0 %v1748_v7 }
 0x4a0   :  { %1593 = vmatprep.subr.bf16.mxu0 %v1712_v0 }
 0x4a3   :  { %1595 = vmatpush3.bf16.msra.mxu0 %v1758_v13 }
 0x4a4   :  { %1596 = vmatprep.subr.bf16.mxu0 %v1712_v0 }
 0x4a7   :  { %1598 = vmatpush3.bf16.msra.mxu0 %v1767_v16 }
 0x4a8   :  { %1599 = vmatprep.subr.bf16.mxu0 %v1712_v0 }
 0x4ab   :  { %1601 = vmatpush3.bf16.msra.mxu0 %v1773_v19 }
 0x4ac   :  { %1602 = vmatprep.subr.bf16.mxu0 %v1712_v0 }
 0x4af   :  { %1604 = vmatpush3.bf16.msra.mxu0 %v1779_v22 }
 0x4b0   :  { %1605 = vmatprep.subr.bf16.mxu0 %v1712_v0 }
 0x4b3   :  { %1607 = vmatpush3.bf16.msra.mxu0 %v1785_v25 }
 0x4b4   :  { %1608 = vmatprep.subr.bf16.mxu0 %v1712_v0 }
 0x4b7   :  { %1610 = vmatpush3.bf16.msra.mxu0 %v1791_v28 }
 0x4b8   :  { %1635 = vmatprep.subr.bf16.mxu0 %v1712_v0 }
 0x56d   :  { %v570_v60 = vpop.f32.mrb[6].mxu0 }
 0x56e   :  { %v571_v61 = vadd.f32 %v570_v60, %v502_v59  ;;  %v1278_v62 = vpop.f32.mrb[7].mxu0 }
 0x570   :  { %1675 = vtanh.f32 %v571_v61 }
 0x57a   :  { %v1676_v63 = vpop.eup %1675 }
 0x57b   :  { %1312 = vmatmul.mubr.f32.vlgmr.msra.gmra.mrb[6].mxu1 %v1676_v63 }
 0x57c   :  { %1613 = vmatpush3.bf16.msra.mxu1 %v1745_v5  ;;  %1381 = vmatprep.mubr.msk.f32.mxu1 %vm1713_vm0, %v1714_v1 }
 0x57d   :  { %1614 = vmatprep.subr.bf16.mxu1 %v1712_v0 }
 0x580   :  { %1616 = vmatpush3.bf16.msra.mxu1 %v1748_v7 }
 0x581   :  { %1617 = vmatprep.subr.bf16.mxu1 %v1712_v0 }
 0x584   :  { %1619 = vmatpush3.bf16.msra.mxu1 %v1758_v13 }
 0x585   :  { %1620 = vmatprep.subr.bf16.mxu1 %v1712_v0 }
 0x588   :  { %1622 = vmatpush3.bf16.msra.mxu1 %v1767_v16 }
 0x589   :  { %1623 = vmatprep.subr.bf16.mxu1 %v1712_v0 }
 0x58c   :  { %1625 = vmatpush3.bf16.msra.mxu1 %v1773_v19 }
 0x58d   :  { %1626 = vmatprep.subr.bf16.mxu1 %v1712_v0 }
 0x590   :  { %1628 = vmatpush3.bf16.msra.mxu1 %v1779_v22 }
 0x591   :  { %1629 = vmatprep.subr.bf16.mxu1 %v1712_v0 }
 0x594   :  { %1631 = vmatpush3.bf16.msra.mxu1 %v1785_v25 }
 0x595   :  { %1632 = vmatprep.subr.bf16.mxu1 %v1712_v0 }
 0x598   :  { %1634 = vmatpush3.bf16.msra.mxu1 %v1791_v28 }
 0x64e   :  { %v643_v3 = vpop.f32.mrb[6].mxu1 }
 0x64f   :  { %v644_v4 = vadd.f32 %v643_v3, %v575_v2  ;;  %v1313_v6 = vpop.f32.mrb[7].mxu1 }
 0x651   :  { %1677 = vtanh.f32 %v644_v4 }
 0x65b   :  { %v1678_v8 = vpop.eup %1677 }
 0x65c   :  { %1347 = vmatmul.mubr.f32.vlgmr.msra.gmra.mrb[8].mxu0 %v1678_v8 }
 0x65d   :  { %1637 = vmatpush3.bf16.msra.mxu0 %v1745_v5  ;;  %1416 = vmatprep.mubr.msk.f32.mxu0 %vm1713_vm0, %v1714_v1  ;;  %v648_v1 = vrot.slane %v1906_v54, 6 }
 0x65e   :  { %1638 = vmatprep.subr.bf16.mxu0 %v1712_v0 }
 0x661   :  { %1640 = vmatpush3.bf16.msra.mxu0 %v1748_v7 }
 0x662   :  { %1641 = vmatprep.subr.bf16.mxu0 %v1712_v0 }
 0x665   :  { %1643 = vmatpush3.bf16.msra.mxu0 %v1758_v13 }
 0x666   :  { %1644 = vmatprep.subr.bf16.mxu0 %v1712_v0 }
 0x669   :  { %1646 = vmatpush3.bf16.msra.mxu0 %v1767_v16 }
 0x66a   :  { %1647 = vmatprep.subr.bf16.mxu0 %v1712_v0 }
 0x66d   :  { %1649 = vmatpush3.bf16.msra.mxu0 %v1773_v19 }
 0x66e   :  { %1650 = vmatprep.subr.bf16.mxu0 %v1712_v0 }
 0x671   :  { %1652 = vmatpush3.bf16.msra.mxu0 %v1779_v22 }
 0x672   :  { %1653 = vmatprep.subr.bf16.mxu0 %v1712_v0 }
 0x675   :  { %1655 = vmatpush3.bf16.msra.mxu0 %v1785_v25 }
 0x676   :  { %1656 = vmatprep.subr.bf16.mxu0 %v1712_v0 }
 0x679   :  { %1658 = vmatpush3.bf16.msra.mxu0 %v1791_v28 }
 0x72f   :  { %v716_v5 = vpop.f32.mrb[8].mxu0 }
 0x730   :  { %v717_v7 = vadd.f32 %v716_v5, %v648_v1  ;;  %v1348_v9 = vpop.f32.mrb[9].mxu0 }
 0x732   :  { %1679 = vtanh.f32 %v717_v7 }
 0x73c   :  { %v1680_v10 = vpop.eup %1679 }
 0x73d   :  { %1382 = vmatmul.mubr.f32.vlgmr.msra.gmra.mrb[8].mxu1 %v1680_v10 }
 0x810   :  { %v787_v11 = vpop.f32.mrb[8].mxu1 }
 0x811   :  { %v788_v12 = vadd.f32 %v1823_v31, %v787_v11  ;;  %v1383_v13 = vpop.f32.mrb[9].mxu1 }
 0x813   :  { %1681 = vtanh.f32 %v788_v12 }
 0x81d   :  { %v1682_v14 = vpop.eup %1681 }
 0x81e   :  { %1417 = vmatmul.mubr.f32.vlgmr.msra.gmra.mrb[10].mxu0 %v1682_v14 }
 0x8f1   :  { %v858_v15 = vpop.f32.mrb[10].mxu0 }
 0x8f2   :  { %v859_v0 = vadd.f32 %v1823_v31, %v858_v15  ;;  %v1418_v16 = vpop.f32.mrb[11].mxu0 }
 0x8f4   :  { %1683 = vtanh.f32 %v859_v0 }
 0x8fe   :  { %v1684_v18 = vpop.eup %1683 }
 0x8ff   :  { %v867_v19 = vmul.f32 %v1684_v18, %v889_v17 }
 0x901   :  { %v869_v20 = vsel %vm868_vm4, %v867_v19, 0.0 }
 0x902   :  { %870 = vadd.xlane.f32.xlu0 %v869_v20 }
 0x98f   :  { %v871_v22 = vpop.xlane.xlu0 %870 }
 0x990   :  { %v876_v23 = vadd.f32 %v890_v21, %v871_v22 }
 0x992   :  { %878 = vst.msk [vmem:[%s1971_s2] sm:$0x3] %vm877_vm5, %v876_v23 }
 0x993   :  { %883 = vsyncpa [#allocation3], 1 }

</bundles_post_ra>
